<compile_context>
chip_gen: v6e
topology: v6e:2x2x1
jax: 0.10.0
libtpu: 0.0.40
codegen_flags: <defaults>
</compile_context>

<pallas_src>
import functools

import jax
import jax.numpy as jnp
from jax.experimental import pallas as pl
from jax.experimental.pallas import tpu as pltpu

INPUT_DIM = 6
HIDDEN_DIM = 40
D1, D2, D3 = 25, 40, 40
LANES = 128
X_PAD = 8  # layer-1 K dim: 6 features + constant-1 column + 1 zero column


def _round_up(n, m):
    return ((n + m - 1) // m) * m


def _cdiv(a, b):
    return -(-a // b)


def phi_kernel(x_ref, w1_ref, w_ref, o_ref, *, compute_dtype, out_dim):
    # Layer 1: (bt, 8) @ (8, 128) -> f32 MXU accumulation.  Column 6 of x is a
    # constant 1, so row 6 of w1_ref supplies b1; lane D1 of the result is the
    # constant-1 sentinel that picks up the folded biases of layers 2..4.
    h = jnp.dot(x_ref[...], w1_ref[...], preferred_element_type=jnp.float32)
    h = jnp.maximum(h, 0.0)
    # Layers 2..4: (bt, 128) @ (128, 128); biases sit in row `in_dim` of each
    # packed matrix and are picked up by the sentinel lane (exact fold).
    h = jnp.dot(h.astype(compute_dtype), w_ref[0], preferred_element_type=jnp.float32)
    h = jnp.maximum(h, 0.0)
    h = jnp.dot(h.astype(compute_dtype), w_ref[1], preferred_element_type=jnp.float32)
    h = jnp.maximum(h, 0.0)
    h = jnp.dot(h.astype(compute_dtype), w_ref[2], preferred_element_type=jnp.float32)
    # Compact store: only the real out_dim lanes, in the consumer's dtype.
    o_ref[...] = h[:, :out_dim].astype(o_ref.dtype)


def pack_params(params, compute_dtype=jnp.bfloat16):
    """Pad weights to 128 lanes; fold ALL biases in via a constant-1 sentinel lane."""
    w1, b1, w2, b2, w3, b3, w4, b4 = params
    out_dim = w4.shape[1]
    assert w1.shape == (INPUT_DIM, D1) and w2.shape == (D1, D2)
    assert w3.shape == (D2, D3) and w4.shape[0] == D3
    assert out_dim <= LANES and max(D1, D2, D3) < LANES  # sentinel lane must fit

    # Layer-1 packed weight (8, 128): rows 0..5 = w1, row 6 = [b1 | 1.0-plant], row 7 = 0.
    w1p = jnp.zeros((X_PAD, LANES), jnp.float32)
    w1p = w1p.at[:INPUT_DIM, :D1].set(w1)
    w1p = w1p.at[INPUT_DIM, :D1].set(b1.reshape(-1))
    w1p = w1p.at[INPUT_DIM, D1].set(1.0)  # sentinel feeding layer-2's bias row

    def fold(w, b, in_dim, odim, plant_ones):
        m = jnp.zeros((LANES, LANES), jnp.float32)
        m = m.at[:in_dim, :odim].set(w)
        m = m.at[in_dim, :odim].set(b.reshape(-1))  # bias as an extra weight row
        if plant_ones:
            m = m.at[in_dim, odim].set(1.0)          # re-plant sentinel for next layer
        return m

    wrest = jnp.stack([
        fold(w2, b2, D1, D2, True),
        fold(w3, b3, D2, D3, True),
        fold(w4, b4, D3, out_dim, False),
    ])
    return w1p.astype(compute_dtype), wrest.astype(compute_dtype), out_dim


def _choose_batch_tiling(B, batch_tile):
    """Tile derived from B: even >=2-step grid (v7x megacore), waste < one tile."""
    assert batch_tile >= 16
    b16 = _round_up(B, 16)
    if b16 <= 32:
        bt = b16                                   # too small to split usefully
    else:
        n_steps = max(2, _cdiv(b16, batch_tile))
        if n_steps % 2:
            n_steps += 1
        bt = min(_round_up(batch_tile, 16), _round_up(_cdiv(b16, n_steps), 16))
    b_pad = _round_up(b16, bt)
    return bt, b_pad


def phi_net_pallas(x, params, *, batch_tile=2048,
                   compute_dtype=jnp.bfloat16, out_dtype=jnp.bfloat16):
    B, in_dim = x.shape
    assert in_dim == INPUT_DIM
    w1p, wrest, out_dim = pack_params(params, compute_dtype)

    bt, b_pad = _choose_batch_tiling(B, batch_tile)
    grid = b_pad // bt

    # x padded to 8 columns; column 6 is the constant-1 that carries b1.
    xpad = jnp.zeros((b_pad, X_PAD), compute_dtype)
    xpad = xpad.at[:B, :INPUT_DIM].set(x.astype(compute_dtype))
    xpad = xpad.at[:, INPUT_DIM].set(jnp.asarray(1.0, compute_dtype))

    kernel = functools.partial(phi_kernel, compute_dtype=compute_dtype, out_dim=out_dim)

    out_bytes = jnp.dtype(out_dtype).itemsize
    cd_bytes = jnp.dtype(compute_dtype).itemsize
    weight_bytes = (X_PAD * LANES + 3 * LANES * LANES) * cd_bytes
    # Rough per-step VMEM: double-buffered x/out tiles + weights + f32 intermediates.
    vmem_est = (2 * bt * X_PAD * cd_bytes
                + 2 * bt * out_dim * out_bytes
                + 3 * bt * LANES * 4
                + 2 * weight_bytes)
    cp_kwargs = dict(dimension_semantics=("parallel",))
    if vmem_est > 12 * 1024 * 1024:  # only relevant when sweeping very large tiles (v5e 16 MiB default)
        cp_kwargs["vmem_limit_bytes"] = int(min(64 * 1024 * 1024, 2 * vmem_est))

    cost = pl.CostEstimate(
        flops=2 * b_pad * (X_PAD * LANES + 3 * LANES * LANES),
        transcendentals=0,
        bytes_accessed=b_pad * X_PAD * cd_bytes + b_pad * out_dim * out_bytes + weight_bytes,
    )

    out = pl.pallas_call(
        kernel,
        out_shape=jax.ShapeDtypeStruct((b_pad, out_dim), out_dtype),
        grid_spec=pltpu.PrefetchScalarGridSpec(
            num_scalar_prefetch=0,
            grid=(grid,),
            in_specs=[
                pl.BlockSpec((bt, X_PAD), lambda i: (i, 0)),            # x tile (bf16)
                pl.BlockSpec((X_PAD, LANES), lambda i: (0, 0)),         # layer-1 W (b1 folded)
                pl.BlockSpec((3, LANES, LANES), lambda i: (0, 0, 0)),   # layers 2-4 (biases folded)
            ],
            out_specs=pl.BlockSpec((bt, out_dim), lambda i: (i, 0)),    # compact (bt, 40) block
        ),
        compiler_params=pltpu.CompilerParams(**cp_kwargs),
        cost_estimate=cost,
    )(xpad, w1p, wrest)

    if b_pad != B:
        out = out[:B]
    return out


def init_params(key, inputdim=INPUT_DIM, hiddendim=HIDDEN_DIM):
    """Deterministic init mirroring nn.Linear default (U[-1/sqrt(fan_in), +])."""
    dims = [(inputdim, D1), (D1, D2), (D2, D3), (D3, hiddendim)]
    params = []
    for (fan_in, fan_out) in dims:
        key, kw, kb = jax.random.split(key, 3)
        bound = 1.0 / (fan_in ** 0.5)
        w = jax.random.uniform(kw, (fan_in, fan_out), jnp.float32, -bound, bound)
        b = jax.random.uniform(kb, (1, fan_out), jnp.float32, -bound, bound)
        params += [w, b]
    return params


def phi_net_ref_matched(x, params, compute_dtype=jnp.bfloat16):
    """Reference matching the kernel's math: operands rounded to compute_dtype,
    products/accumulation in f32 (what the MXU computes, before the final store cast)."""
    w1, b1, w2, b2, w3, b3, w4, b4 = params
    r = lambda a: a.astype(compute_dtype).astype(jnp.float32)
    h = jnp.maximum(r(x) @ r(w1) + r(b1), 0.0)
    h = jnp.maximum(r(h) @ r(w2) + r(b2), 0.0)
    h = jnp.maximum(r(h) @ r(w3) + r(b3), 0.0)
    return r(h) @ r(w4) + r(b4)


def phi_net_ref_f32(x, params):
    w1, b1, w2, b2, w3, b3, w4, b4 = params
    h = jnp.maximum(x @ w1 + b1, 0.0)
    h = jnp.maximum(h @ w2 + b2, 0.0)
    h = jnp.maximum(h @ w3 + b3, 0.0)
    return h @ w4 + b4


if __name__ == "__main__":
    key = jax.random.PRNGKey(0)
    key, kx = jax.random.split(key)
    B = 48  # small and ragged vs the derived tile -> exercises pad + 2-step grid
    x = jax.random.normal(kx, (B, INPUT_DIM), jnp.float32)
    params = init_params(key)

    out = jax.block_until_ready(phi_net_pallas(x, params))

    assert out.shape == (B, HIDDEN_DIM)
    assert out.dtype == jnp.bfloat16
    out_f32 = out.astype(jnp.float32)

    # Tight check vs. a reference computing the identical bf16-operand /
    # f32-accumulate math (validates the bias fold / padding / tiling); the only
    # extra error is the final bf16 output rounding.
    ref_m = phi_net_ref_matched(x, params)
    err_m = float(jnp.max(jnp.abs(out_f32 - ref_m)))
    assert jnp.allclose(out_f32, ref_m, atol=3e-2, rtol=3e-2), err_m

    # Loose sanity check vs. the pure-f32 forward pass of the module.
    ref_f32 = phi_net_ref_f32(x, params)
    err_f = float(jnp.max(jnp.abs(out_f32 - ref_f32)))
    assert jnp.allclose(out_f32, ref_f32, atol=1.5e-1, rtol=1.5e-1), err_f

    print("KERNEL_OK")
</pallas_src>

<mosaic_0001>
module attributes {stable_mosaic.version = 11 : i64} {
  func.func @phi_kernel(%arg0: i32, %arg1: memref<32x8xbf16, #tpu.memory_space<vmem>>, %arg2: memref<8x128xbf16, #tpu.memory_space<vmem>>, %arg3: memref<3x128x128xbf16, #tpu.memory_space<vmem>>, %arg4: memref<32x40xbf16, #tpu.memory_space<vmem>>) attributes {dimension_semantics = [#tpu.dimension_semantics<parallel>], iteration_bounds = array<i64: 2>, scalar_prefetch = 0 : i64, scratch_operands = 0 : i64, tpu.core_type = #tpu.core_type<tc>, window_params = [{transform_indices = @transform_0, window_bounds = array<i64: 32, 8>}, {pipeline_mode = #tpu.pipeline_mode<synchronous>, transform_indices = @transform_1, window_bounds = array<i64: 8, 128>}, {pipeline_mode = #tpu.pipeline_mode<synchronous>, transform_indices = @transform_2, window_bounds = array<i64: 3, 128, 128>}, {transform_indices = @transform_3, window_bounds = array<i64: 32, 40>}]} {
    %c0 = arith.constant 0 : index
    %c0_0 = arith.constant 0 : index
    %0 = vector.load %arg1[%c0, %c0_0] : memref<32x8xbf16, #tpu.memory_space<vmem>>, vector<32x8xbf16>
    %c0_1 = arith.constant 0 : index
    %c0_2 = arith.constant 0 : index
    %1 = vector.load %arg2[%c0_1, %c0_2] : memref<8x128xbf16, #tpu.memory_space<vmem>>, vector<8x128xbf16>
    %cst = arith.constant dense<0.000000e+00> : vector<32x128xf32>
    %2 = tpu.matmul %0, %1, %cst {dimension_numbers = #tpu.dot_dimension_numbers<[1], [0], [0], [1], [0, 0, 1, 1], [], []>} : vector<32x8xbf16>, vector<8x128xbf16>, vector<32x128xf32> -> vector<32x128xf32>
    %cst_3 = arith.constant 0.000000e+00 : f32
    %3 = vector.broadcast %cst_3 : f32 to vector<32x128xf32>
    %4 = arith.maximumf %2, %3 : vector<32x128xf32>
    %5 = arith.truncf %4 : vector<32x128xf32> to vector<32x128xbf16>
    %c0_4 = arith.constant 0 : index
    %c0_5 = arith.constant 0 : index
    %c0_6 = arith.constant 0 : index
    %6 = vector.load %arg3[%c0_4, %c0_5, %c0_6] : memref<3x128x128xbf16, #tpu.memory_space<vmem>>, vector<1x128x128xbf16>
    %7 = vector.shape_cast %6 : vector<1x128x128xbf16> to vector<128x128xbf16>
    %cst_7 = arith.constant dense<0.000000e+00> : vector<32x128xf32>
    %8 = tpu.matmul %5, %7, %cst_7 {dimension_numbers = #tpu.dot_dimension_numbers<[1], [0], [0], [1], [0, 0, 1, 1], [], []>} : vector<32x128xbf16>, vector<128x128xbf16>, vector<32x128xf32> -> vector<32x128xf32>
    %cst_8 = arith.constant 0.000000e+00 : f32
    %9 = vector.broadcast %cst_8 : f32 to vector<32x128xf32>
    %10 = arith.maximumf %8, %9 : vector<32x128xf32>
    %11 = arith.truncf %10 : vector<32x128xf32> to vector<32x128xbf16>
    %c1 = arith.constant 1 : index
    %c0_9 = arith.constant 0 : index
    %c0_10 = arith.constant 0 : index
    %12 = vector.load %arg3[%c1, %c0_9, %c0_10] : memref<3x128x128xbf16, #tpu.memory_space<vmem>>, vector<1x128x128xbf16>
    %13 = vector.shape_cast %12 : vector<1x128x128xbf16> to vector<128x128xbf16>
    %cst_11 = arith.constant dense<0.000000e+00> : vector<32x128xf32>
    %14 = tpu.matmul %11, %13, %cst_11 {dimension_numbers = #tpu.dot_dimension_numbers<[1], [0], [0], [1], [0, 0, 1, 1], [], []>} : vector<32x128xbf16>, vector<128x128xbf16>, vector<32x128xf32> -> vector<32x128xf32>
    %cst_12 = arith.constant 0.000000e+00 : f32
    %15 = vector.broadcast %cst_12 : f32 to vector<32x128xf32>
    %16 = arith.maximumf %14, %15 : vector<32x128xf32>
    %17 = arith.truncf %16 : vector<32x128xf32> to vector<32x128xbf16>
    %c2 = arith.constant 2 : index
    %c0_13 = arith.constant 0 : index
    %c0_14 = arith.constant 0 : index
    %18 = vector.load %arg3[%c2, %c0_13, %c0_14] : memref<3x128x128xbf16, #tpu.memory_space<vmem>>, vector<1x128x128xbf16>
    %19 = vector.shape_cast %18 : vector<1x128x128xbf16> to vector<128x128xbf16>
    %cst_15 = arith.constant dense<0.000000e+00> : vector<32x128xf32>
    %20 = tpu.matmul %17, %19, %cst_15 {dimension_numbers = #tpu.dot_dimension_numbers<[1], [0], [0], [1], [0, 0, 1, 1], [], []>} : vector<32x128xbf16>, vector<128x128xbf16>, vector<32x128xf32> -> vector<32x128xf32>
    %21 = vector.extract_strided_slice %20 {offsets = [0, 0], sizes = [32, 40], strides = [1, 1]} : vector<32x128xf32> to vector<32x40xf32>
    %22 = arith.truncf %21 : vector<32x40xf32> to vector<32x40xbf16>
    %c0_16 = arith.constant 0 : index
    %c0_17 = arith.constant 0 : index
    %23 = vector.load %arg4[%c0_16, %c0_17] : memref<32x40xbf16, #tpu.memory_space<vmem>>, vector<32x40xbf16>
    tpu.vector_store %arg4[%c0_16, %c0_17], %22 {strides = array<i32>} : memref<32x40xbf16, #tpu.memory_space<vmem>>, vector<32x40xbf16>,
    return
  }
  func.func @transform_0(%arg0: i32) -> (i32, i32) {
    %c0_i32 = arith.constant 0 : i32
    %c0_i32_0 = arith.constant 0 : i32
    return %arg0, %c0_i32 : i32, i32
  }
  func.func @transform_1(%arg0: i32) -> (i32, i32) {
    %c0_i32 = arith.constant 0 : i32
    %c0_i32_0 = arith.constant 0 : i32
    %c0_i32_1 = arith.constant 0 : i32
    return %c0_i32, %c0_i32_0 : i32, i32
  }
  func.func @transform_2(%arg0: i32) -> (i32, i32, i32) {
    %c0_i32 = arith.constant 0 : i32
    %c0_i32_0 = arith.constant 0 : i32
    %c0_i32_1 = arith.constant 0 : i32
    %c0_i32_2 = arith.constant 0 : i32
    return %c0_i32, %c0_i32_0, %c0_i32_1 : i32, i32, i32
  }
  func.func @transform_3(%arg0: i32) -> (i32, i32) {
    %c0_i32 = arith.constant 0 : i32
    %c0_i32_0 = arith.constant 0 : i32
    return %arg0, %c0_i32 : i32, i32
  }
}

</mosaic_0001>

<bundles_post_ra>
// kernel: tpu_custom_call.1
= control target key start
LH: loop header
LB: loop body
LE: loop exit
PB: predicated region body
PF: predicated region fallthrough
CT: control target
= control target key end

     0   :  { %8 = vsyncpa [#allocation3], 0  ;;  %s970_s12 = smov 0   ;;  %s1018_s0 = inlined_call_operand.vmem [shape: bf16[64,8], index: 0, kind: input, shape index: {}]   ;;  %s1019_s1 = inlined_call_operand.vmem [shape: bf16[8,128], index: 1, kind: input, shape index: {}]   ;;  %s1020_s2 = inlined_call_operand.hbm [shape: bf16[3,128,128], index: 2, kind: input, shape index: {}]   ;;  %s1021_s3 = inlined_call_operand.vmem [shape: bf16[64,40], index: 3, kind: output, shape index: {}]  }
   0x1 LB: > { %s713_s13 = sadd.s32 4294967295, %s945_s12   ;;  %p715_p0 = scmp.ge.s32.totalorder %s945_s12, 1  ;;  %s945_s12 = sphi %s970_s12, %s14_s12  }
   0x2   : > { %p113_p1 = scmp.lt.s32.totalorder %s945_s12, 3  ;;  %s947_s14 = smov [#allocation2]  }
   0x3   : > { %s128_s15 = sshll.u32 %s947_s14, 4  ;;  %p982_p3 = scmp.eq.s32.totalorder %s713_s13, 0  ;;  %s129_s15 = int_to_ptr.vmem [resolvable:$true] %s128_s15 }
   0x4   : > { %p978_p2 = pnand %p715_p0, %p113_p1  ;;  %s920_s18 = scalar_lea.vmem %s129_s15, 3072 }
   0x5   : > { %p921_p7 = scmp.ne.s32.totalorder %s129_s15, %s920_s18  ;;  %p928_p10 = scmp.lt.s32.totalorder %s129_s15, %s129_s15 }
   0x6   : > { %p866_p4 = pneg %p978_p2  ;;  %p929_p11 = scmp.lt.s32.totalorder %s920_s18, %s920_s18 }
   0x8   : > { %p867_p5 = pnand %p982_p3, %p866_p4  ;;  %p930_p12 = por %p929_p11, %p928_p10 }
   0xa   : > { %p911_p6 = pneg %p867_p5 }
   0xc   : > { %p923_p8 = pnand %p921_p7, %p911_p6 }
   0xe   : > { %p924_p9 = pneg %p923_p8 }
  0x10   : > { %p931_p13 = pnand %p930_p12, %p924_p9 }
  0x12   : > { %934 = shalt.err (!%p931_p13)
}
  0x13   : > { %s948_s19 = smov 64   ;;  %s949_s20 = smov 4  }
  0x14   : > { %869 = dma.hbm_to_vmem [thread:$0]  (!%p867_p5), %s1020_s2, 3072, %s129_s15, [#allocation3], %s948_s19, %s948_s19, %s949_s20  }
  0x15   : > { %153 = sbr.rel (%p978_p2) target bundleno = 849 (0x351), region = 32 }
  0x1a   : > { %940 = dma.done.wait (%p982_p3), [#allocation3], 3072  }
  0x1b   : > { %942 = vsyncadd (%p982_p3), [#allocation3], 4294964224  ;;  %s720_s23 = sshll.u32 %s713_s13, 2  ;;  %vm212_vm0 = vcmask 1043456   ;;  %vm205_vm1 = vcmask 64512   ;;  %v885_v4 = vld [vmem:[#allocation2 + $0x38] sm:$0xff]  }
  0x1c   : > { %p178_p0 = scmp.lt.s32.totalorder %s720_s23, 7  ;;  %v194_v0 = vld [vmem:[%s1019_s1] sm:$0xf]  ;;  %v886_v5 = vld [vmem:[#allocation2 + $0x30] sm:$0xff]   ;;  %801 = vmatprep.subr.bf16.mxu1 %v885_v4  ;;  %v887_v6 = vld [vmem:[#allocation2 + $0x28] sm:$0xff]   ;;  %vm640_vm2 = vcmask 322560  }
  0x1d   : > { %861 = vmatprep.subr.msk.bf16.mxu0 %vm212_vm0, %v194_v0  ;;  %v214_v1 = vsel %vm212_vm0, %v194_v0, 0  ;;  %802 = vmatpush3.bf16.msra.mxu1 %v885_v4  ;;  %v888_v7 = vld [vmem:[#allocation2 + $0x20] sm:$0xff]   ;;  %v889_v8 = vld [vmem:[#allocation2 + $0x18] sm:$0xff]   ;;  %v890_v9 = vld [vmem:[#allocation2 + $0x10] sm:$0xff]  }
  0x1e   : > { %s1025_s23 = smov (!%p178_p0, %s720_s23), 7  ;;  %796 = vmatpush3.bf16.msra.mxu0 %v214_v1  ;;  %803 = vmatprep.subr.bf16.mxu1 %v886_v5  ;;  %v891_v10 = vld [vmem:[#allocation2 + $0x8] sm:$0xff]   ;;  %v892_v11 = vld [vmem:[#allocation2] sm:$0xff]   ;;  %v893_v12 = vld [vmem:[#allocation2 + $0x78] sm:$0xff]  }
  0x1f   : > { %s721_s24 = sshll.u32 %s1025_s23, 2  ;;  %v894_v13 = vld [vmem:[#allocation2 + $0x70] sm:$0xff]   ;;  %821 = vmatprep.subr.bf16.mxu0 %v893_v12  ;;  %v895_v14 = vld [vmem:[#allocation2 + $0x68] sm:$0xff]   ;;  %v896_v15 = vld [vmem:[#allocation2 + $0x60] sm:$0xff]  }
  0x20   : > { %s181_s27 = scalar_lea.vmem %s1018_s0, %s721_s24  ;;  %v897_v16 = vld [vmem:[#allocation2 + $0x58] sm:$0xff]   ;;  %v898_v27 = vld [vmem:[#allocation2 + $0x50] sm:$0xff]   ;;  %v899_v28 = vld [vmem:[#allocation2 + $0x48] sm:$0xff]   ;;  %s187_s5 = scalar_lea.vmem %s1021_s3, %s721_s24 }
  0x21   : > { %v883_v2 = vld [vmem:[%s181_s27] sm:$0xff]   ;;  %v884_v3 = vld [vmem:[%s181_s27 + $0x8] sm:$0xff]   ;;  %804 = vmatpush3.bf16.msra.mxu1 %v886_v5  ;;  %v901_v30 = vld [vmem:[#allocation2 + $0xb8] sm:$0xff]  }
  0x22   : > { %797 = vmatprep.mubr.msk.bf16.mxu0 %vm205_vm1, %v883_v2  ;;  %805 = vmatprep.subr.bf16.mxu1 %v887_v6  ;;  %v900_v29 = vld [vmem:[#allocation2 + $0x40] sm:$0xff]   ;;  %v902_v31 = vld [vmem:[#allocation2 + $0xb0] sm:$0xff]   ;;  %v903_v32 = vld [vmem:[#allocation2 + $0xa8] sm:$0xff]  }
  0x23   : > { %798 = vmatmul.mubr.msk.bf16.vlgmr.msra.gmra.mxu0 %vm205_vm1, %v884_v3  ;;  %v904_v33 = vld [vmem:[#allocation2 + $0xa0] sm:$0xff]   ;;  %v905_v34 = vld [vmem:[#allocation2 + $0x98] sm:$0xff]   ;;  %v906_v45 = vld [vmem:[#allocation2 + $0x90] sm:$0xff]  }
  0x24   : > { %822 = vmatpush3.bf16.msra.mxu0 %v893_v12  ;;  %v907_v46 = vld [vmem:[#allocation2 + $0x88] sm:$0xff]   ;;  %v908_v47 = vld [vmem:[#allocation2 + $0x80] sm:$0xff]  }
  0x25   : > { %806 = vmatpush3.bf16.msra.mxu1 %v887_v6  ;;  %823 = vmatprep.subr.bf16.mxu0 %v894_v13 }
  0x26   : > { %807 = vmatprep.subr.bf16.mxu1 %v888_v7 }
  0x28   : > { %824 = vmatpush3.bf16.msra.mxu0 %v894_v13 }
  0x29   : > { %808 = vmatpush3.bf16.msra.mxu1 %v888_v7  ;;  %825 = vmatprep.subr.bf16.mxu0 %v895_v14 }
  0x2a   : > { %809 = vmatprep.subr.bf16.mxu1 %v889_v8 }
  0x2c   : > { %826 = vmatpush3.bf16.msra.mxu0 %v895_v14 }
  0x2d   : > { %810 = vmatpush3.bf16.msra.mxu1 %v889_v8  ;;  %827 = vmatprep.subr.bf16.mxu0 %v896_v15 }
  0x2e   : > { %811 = vmatprep.subr.bf16.mxu1 %v890_v9 }
  0x30   : > { %828 = vmatpush3.bf16.msra.mxu0 %v896_v15 }
  0x31   : > { %812 = vmatpush3.bf16.msra.mxu1 %v890_v9  ;;  %829 = vmatprep.subr.bf16.mxu0 %v897_v16 }
  0x32   : > { %813 = vmatprep.subr.bf16.mxu1 %v891_v10 }
  0x34   : > { %830 = vmatpush3.bf16.msra.mxu0 %v897_v16 }
  0x35   : > { %814 = vmatpush3.bf16.msra.mxu1 %v891_v10  ;;  %831 = vmatprep.subr.bf16.mxu0 %v898_v27 }
  0x36   : > { %815 = vmatprep.subr.bf16.mxu1 %v892_v11 }
  0x38   : > { %832 = vmatpush3.bf16.msra.mxu0 %v898_v27 }
  0x39   : > { %816 = vmatpush3.bf16.msra.mxu1 %v892_v11  ;;  %833 = vmatprep.subr.bf16.mxu0 %v899_v28 }
  0x3a   : > { %841 = vmatprep.subr.bf16.mxu1 %v901_v30 }
  0x3c   : > { %834 = vmatpush3.bf16.msra.mxu0 %v899_v28 }
  0x3d   : > { %835 = vmatprep.subr.bf16.mxu0 %v900_v29 }
  0x40   : > { %836 = vmatpush3.bf16.msra.mxu0 %v900_v29 }
  0xe3   : > { %v799_v17 = vpop.f32.mrf.mxu0 }
  0xe4   : > { %v267_v24 = vmax.f32 %v799_v17, 0.0 }
  0xe5   : > { %v250_v18 = vpop.f32.mrf.mxu0 }
  0xe6   : > { %v265_v22 = vmax.f32 %v250_v18, 0.0 }
  0xe7   : > { %v800_v19 = vpop.f32.mrf.mxu0 }
  0xe8   : > { %v268_v20 = vmax.f32 %v800_v19, 0.0 }
  0xe9   : > { %v253_v21 = vpop.f32.mrf.mxu0 }
  0xea   : > { %v266_v23 = vmax.f32 %v253_v21, 0.0  ;;  %v270_v26 = vpack.c.bf16 %v268_v20, %v267_v24 }
  0xec   : > { %v269_v25 = vpack.c.bf16 %v266_v23, %v265_v22 }
  0xee   : > { %817 = vmatprep.mubr.bf16.mxu1 %v269_v25 }
  0xef   : > { %818 = vmatmul.mubr.bf16.vlgmr.msra.gmra.mxu1 %v270_v26 }
  0xf0   : > { %842 = vmatpush3.bf16.msra.mxu1 %v901_v30 }
  0xf1   : > { %843 = vmatprep.subr.bf16.mxu1 %v902_v31 }
  0xf4   : > { %844 = vmatpush3.bf16.msra.mxu1 %v902_v31 }
  0xf5   : > { %845 = vmatprep.subr.bf16.mxu1 %v903_v32 }
  0xf8   : > { %846 = vmatpush3.bf16.msra.mxu1 %v903_v32 }
  0xf9   : > { %847 = vmatprep.subr.bf16.mxu1 %v904_v33 }
  0xfc   : > { %848 = vmatpush3.bf16.msra.mxu1 %v904_v33 }
  0xfd   : > { %849 = vmatprep.subr.bf16.mxu1 %v905_v34 }
 0x100   : > { %850 = vmatpush3.bf16.msra.mxu1 %v905_v34 }
 0x101   : > { %851 = vmatprep.subr.bf16.mxu1 %v906_v45 }
 0x104   : > { %852 = vmatpush3.bf16.msra.mxu1 %v906_v45 }
 0x105   : > { %853 = vmatprep.subr.bf16.mxu1 %v907_v46 }
 0x108   : > { %854 = vmatpush3.bf16.msra.mxu1 %v907_v46 }
 0x109   : > { %855 = vmatprep.subr.bf16.mxu1 %v908_v47 }
 0x10c   : > { %856 = vmatpush3.bf16.msra.mxu1 %v908_v47 }
 0x1af   : > { %v819_v35 = vpop.f32.mrf.mxu1 }
 0x1b0   : > { %v386_v42 = vmax.f32 %v819_v35, 0.0 }
 0x1b1   : > { %v369_v36 = vpop.f32.mrf.mxu1 }
 0x1b2   : > { %v384_v40 = vmax.f32 %v369_v36, 0.0 }
 0x1b3   : > { %v820_v37 = vpop.f32.mrf.mxu1 }
 0x1b4   : > { %v387_v38 = vmax.f32 %v820_v37, 0.0 }
 0x1b5   : > { %v372_v39 = vpop.f32.mrf.mxu1 }
 0x1b6   : > { %v385_v41 = vmax.f32 %v372_v39, 0.0  ;;  %v389_v44 = vpack.c.bf16 %v387_v38, %v386_v42 }
 0x1b8   : > { %v388_v43 = vpack.c.bf16 %v385_v41, %v384_v40 }
 0x1ba   : > { %837 = vmatprep.mubr.bf16.mxu0 %v388_v43 }
 0x1bb   : > { %838 = vmatmul.mubr.bf16.vlgmr.msra.gmra.mxu0 %v389_v44 }
 0x27b   : > { %v839_v48 = vpop.f32.mrf.mxu0 }
 0x27c   : > { %v506_v55 = vmax.f32 %v839_v48, 0.0 }
 0x27d   : > { %v489_v49 = vpop.f32.mrf.mxu0 }
 0x27e   : > { %v504_v53 = vmax.f32 %v489_v49, 0.0 }
 0x27f   : > { %v840_v50 = vpop.f32.mrf.mxu0 }
 0x280   : > { %v507_v51 = vmax.f32 %v840_v50, 0.0 }
 0x281   : > { %v492_v52 = vpop.f32.mrf.mxu0 }
 0x282   : > { %v505_v54 = vmax.f32 %v492_v52, 0.0  ;;  %v509_v57 = vpack.c.bf16 %v507_v51, %v506_v55 }
 0x284   : > { %v508_v56 = vpack.c.bf16 %v505_v54, %v504_v53 }
 0x286   : > { %857 = vmatprep.mubr.bf16.mxu1 %v508_v56 }
 0x287   : > { %858 = vmatmul.mubr.bf16.vlgmr.msra.gmra.mxu1 %v509_v57 }
 0x347   : > { %v859_v58 = vpop.f32.mrf.mxu1 }
 0x348   : > { %v760_v0 = vpack.c.bf16 %v859_v58, %v859_v58 }
 0x349   : > { %v609_v59 = vpop.f32.mrf.mxu1 }
 0x34a   : > { %v758_v60 = vpack.c.bf16 %v609_v59, %v609_v59  ;;  %643 = vst.msk [vmem:[%s187_s5 + $0x8] sm:$0xf] %vm640_vm2, %v760_v0 }
 0x34b   : > { %v860_v61 = vpop.f32.mrf.mxu1 }
 0x34c   : > { %641 = vst.msk [vmem:[%s187_s5] sm:$0xf] %vm640_vm2, %v758_v60  ;;  %v761_v1 = vpack.c.bf16 %v860_v61, %v860_v61 }
 0x34d   : > { %v612_v62 = vpop.f32.mrf.mxu1 }
 0x34e   : > { %v759_v63 = vpack.c.bf16 %v612_v62, %v612_v62  ;;  %644 = vst.msk [vmem:[%s187_s5 + $0xc] sm:$0xf] %vm640_vm2, %v761_v1 }
 0x350   : > { %642 = vst.msk [vmem:[%s187_s5 + $0x4] sm:$0xf] %vm640_vm2, %v759_v63 }
 0x351 PF: > { %s14_s12 = sadd.s32 1, %s945_s12  }
 0x352   : > { %p11_p1 = scmp.ge.s32.totalorder %s14_s12, 4  }
 0x354   :  { %13 = sbr.rel (!%p11_p1) target bundleno = 1 (0x1), region = 69 }
 0x359   :  { %667 = vsyncpa [#allocation3], 1 }
 0x35a   :  { %669 = vsyncpa [#allocation3 + $0x1], 1 }

</bundles_post_ra>
